<compile_context>
chip_gen: v7x
topology: tpu7x:2x2x1
jax: 0.10.0
libtpu: 0.0.40
codegen_flags: <defaults>
</compile_context>

<pallas_src>
import functools

import jax
import jax.numpy as jnp
from jax import lax
from jax.experimental import pallas as pl
from jax.experimental.pallas import tpu as pltpu


def _dilated_block_kernel(x_ref, w1_ref, w2_ref, w3_ref, wsc_ref, sh_ref,
                          msk_ref, o_ref, *, W, dilation, nb):
    # x_ref   : (nb, C, M)   nb images, M = H*W on the lane axis
    # w1/w3/wsc_ref : (C, C) folded 1x1 conv weights (resident across steps)
    # w2_ref  : (9, C, C)    folded 3x3 taps, k = 3*i + j
    # sh_ref  : (4, C, 1)    folded BN shifts for the 4 conv+BN stages
    # msk_ref : (9, 1, M)    1.0 where the dilated tap stays inside the image
    f32 = jnp.float32
    d = dilation

    # Resident operands: index_map is constant, so they are DMA'd once.
    w1 = w1_ref[...]
    w2 = w2_ref[...]
    w3 = w3_ref[...]
    wsc = wsc_ref[...]
    s1, s2, s3, ssc = sh_ref[0], sh_ref[1], sh_ref[2], sh_ref[3]   # (C, 1)

    for b in range(nb):                                    # statically unrolled
        x = x_ref[b]                                       # (C, M)

        # ---- 1x1 conv + folded BN + ReLU -----------------------------------
        t1 = jnp.dot(w1, x, preferred_element_type=f32)
        t1 = jnp.maximum(t1 + s1, 0.0)                     # (C, M)

        # ---- dilated 3x3 conv + folded BN + ReLU ----------------------------
        # "same" conv (padding == dilation): tap (i, j) reads t1 at spatial
        # offset ((i-1)*d, (j-1)*d), i.e. a flat lane shift of
        # s = (i-1)*d*W + (j-1)*d.  Out-of-image taps are zeroed by the
        # precomputed masks, so jnp.roll's circular wrap never leaks in.
        acc = jnp.dot(w2[4], t1, preferred_element_type=f32)   # centre tap
        for i in range(3):
            for j in range(3):
                if i == 1 and j == 1:
                    continue
                s = (i - 1) * d * W + (j - 1) * d
                src = jnp.roll(t1, -s, axis=1) if s else t1     # src[m]=t1[m+s]
                src = src * msk_ref[3 * i + j]                  # (C,M) * (1,M)
                acc = acc + jnp.dot(w2[3 * i + j], src,
                                    preferred_element_type=f32)
        t2 = jnp.maximum(acc + s2, 0.0)

        # ---- 1x1 conv + folded BN + ReLU -----------------------------------
        t3 = jnp.dot(w3, t2, preferred_element_type=f32)
        t3 = jnp.maximum(t3 + s3, 0.0)

        # ---- shortcut: 1x1 conv + folded BN (no ReLU) -----------------------
        sc = jnp.dot(wsc, x, preferred_element_type=f32) + ssc

        # ---- residual add + final ReLU (lane-dense store) -------------------
        o_ref[b] = jnp.maximum(t3 + sc, 0.0).astype(o_ref.dtype)


def _fold_bn(w, b, gamma, beta, mean, var, eps):
    """Fold an inference-mode BatchNorm into the preceding conv."""
    s = gamma / jnp.sqrt(var + eps)                        # (C_out,)
    return w * s[:, None, None, None], b * s + beta - mean * s


def dilated_with_projection(x_nchw, params, dilate_rate=2, eps=1e-5):
    """Fused forward pass of Dilated_with_projection (inference-mode BN).

    The dilated 3x3 conv uses padding == dilate_rate ("same" output size),
    which is required for the residual add to be well defined.
    # TODO(synk): the original PyTorch module hard-codes padding=1 on the
    # dilated conv, which for dilate_rate > 1 makes the residual add
    # shape-mismatched (that module cannot run); dilate_rate=1 matches it
    # exactly, dilate_rate>1 uses padding = dilation instead.
    """
    N, C, H, W = x_nchw.shape
    M = H * W
    d = int(dilate_rate)

    # ---- fold BN into conv weights (tiny plain-JAX glue) --------------------
    w1f, s1 = _fold_bn(params["w1"], params["b1"], *params["bn1"], eps)
    w2f, s2 = _fold_bn(params["w2"], params["b2"], *params["bn2"], eps)
    w3f, s3 = _fold_bn(params["w3"], params["b3"], *params["bn3"], eps)
    wscf, ssc = _fold_bn(params["wsc"], params["bsc"], *params["bnsc"], eps)

    w1k = w1f[:, :, 0, 0]                                  # (C, C)
    w3k = w3f[:, :, 0, 0]
    wsck = wscf[:, :, 0, 0]
    w2k = jnp.transpose(w2f, (2, 3, 0, 1)).reshape(9, C, C)   # tap-major
    shifts = jnp.stack([s1, s2, s3, ssc], 0).reshape(4, C, 1)

    # boundary masks for the 9 dilated taps (tiny constants, resident in VMEM)
    hh = jnp.arange(M, dtype=jnp.int32) // W
    ww = jnp.arange(M, dtype=jnp.int32) % W
    mlist = []
    for i in range(3):
        for j in range(3):
            dh, dw = (i - 1) * d, (j - 1) * d
            ok = ((hh + dh >= 0) & (hh + dh < H) &
                  (ww + dw >= 0) & (ww + dw < W))
            mlist.append(ok.astype(jnp.float32))
    masks = jnp.stack(mlist, 0).reshape(9, 1, M)

    x_flat = x_nchw.reshape(N, C, M)        # free reshape; data stays NCHW

    # ---- batch-block size: biggest block that keeps DMAs chunky -------------
    per_img = C * M * 4
    nb = 1
    for cand in range(min(N, 4), 0, -1):
        if N % cand == 0 and cand * per_img <= (1 << 20):
            nb = cand
            break

    kernel = functools.partial(_dilated_block_kernel, W=W, dilation=d, nb=nb)

    # VMEM budget: double-buffered in/out image blocks + resident weights/masks
    # + slack for the fp32 intermediates; capped at 48 MiB so it also fits v7x
    # (64 MiB / TensorCore) while allowing large images on v5e/v6e (128 MiB).
    resident = (12 * C * C + 4 * C + 9 * M) * 4
    est = 4 * nb * per_img + 8 * nb * per_img + 2 * resident
    vmem_limit = int(min(max(2 * est, 32 * 1024 * 1024), 48 * 1024 * 1024))

    cost = pl.CostEstimate(
        flops=2 * N * M * C * C * 12,       # 3x 1x1 convs + 9-tap 3x3 + shortcut
        transcendentals=0,
        bytes_accessed=4 * (2 * N * C * M + 12 * C * C + 4 * C + 9 * M))

    out_flat = pl.pallas_call(
        kernel,
        out_shape=jax.ShapeDtypeStruct((N, C, M), x_nchw.dtype),
        grid=(N // nb,),                                   # nb images per step
        in_specs=[
            pl.BlockSpec((nb, C, M), lambda n: (n, 0, 0)),     # x image block
            pl.BlockSpec((C, C), lambda n: (0, 0)),            # w1   (resident)
            pl.BlockSpec((9, C, C), lambda n: (0, 0, 0)),      # w2 taps
            pl.BlockSpec((C, C), lambda n: (0, 0)),            # w3
            pl.BlockSpec((C, C), lambda n: (0, 0)),            # shortcut w
            pl.BlockSpec((4, C, 1), lambda n: (0, 0, 0)),      # folded BN shifts
            pl.BlockSpec((9, 1, M), lambda n: (0, 0, 0)),      # tap masks
        ],
        out_specs=pl.BlockSpec((nb, C, M), lambda n: (n, 0, 0)),
        compiler_params=pltpu.CompilerParams(
            dimension_semantics=("parallel",),   # shards batch across v7x cores
            vmem_limit_bytes=vmem_limit),
        cost_estimate=cost,
    )(x_flat, w1k, w2k, w3k, wsck, shifts, masks)

    # TODO(synk): for very large images (C*H*W*4B beyond the VMEM budget) the
    # grid would need an extra spatial axis with dilation-sized halo rows.
    return out_flat.reshape(N, C, H, W)


# ----------------------------- pure-JAX reference ----------------------------
def _reference(x, params, dilate_rate, eps=1e-5):
    d = int(dilate_rate)

    def bn(y, stats):
        g, b, m, v = stats
        s = g / jnp.sqrt(v + eps)
        return y * s[None, :, None, None] + (b - m * s)[None, :, None, None]

    def conv1x1(y, w, b):
        return (jnp.einsum("nchw,oc->nohw", y, w[:, :, 0, 0])
                + b[None, :, None, None])

    t = jnp.maximum(bn(conv1x1(x, params["w1"], params["b1"]), params["bn1"]), 0.0)
    t = lax.conv_general_dilated(
        t, params["w2"], window_strides=(1, 1), padding=((d, d), (d, d)),
        rhs_dilation=(d, d), dimension_numbers=("NCHW", "OIHW", "NCHW"))
    t = jnp.maximum(bn(t + params["b2"][None, :, None, None], params["bn2"]), 0.0)
    t = jnp.maximum(bn(conv1x1(t, params["w3"], params["b3"]), params["bn3"]), 0.0)
    sc = bn(conv1x1(x, params["wsc"], params["bsc"]), params["bnsc"])
    return jnp.maximum(t + sc, 0.0)


def init_params(key, C):
    keys = iter(jax.random.split(key, 24))

    def nrm(shape, scale=0.1):
        return scale * jax.random.normal(next(keys), shape, dtype=jnp.float32)

    def bn_stats():
        return (1.0 + nrm((C,)),               # gamma
                nrm((C,)),                     # beta
                nrm((C,)),                     # running_mean
                jnp.abs(1.0 + nrm((C,))))      # running_var

    return {
        "w1": nrm((C, C, 1, 1), 0.4), "b1": nrm((C,)), "bn1": bn_stats(),
        "w2": nrm((C, C, 3, 3), 0.2), "b2": nrm((C,)), "bn2": bn_stats(),
        "w3": nrm((C, C, 1, 1), 0.4), "b3": nrm((C,)), "bn3": bn_stats(),
        "wsc": nrm((C, C, 1, 1), 0.4), "bsc": nrm((C,)), "bnsc": bn_stats(),
    }


if __name__ == "__main__":
    N, C, H, W = 2, 4, 16, 16
    key = jax.random.PRNGKey(0)
    kx, kp = jax.random.split(key)
    x = jax.random.normal(kx, (N, C, H, W), dtype=jnp.float32)
    params = init_params(kp, C)

    # dilate_rate=1 reproduces the original module exactly (padding=1 is only
    # shape-consistent with the residual add when dilation == 1);
    # dilate_rate=2 exercises the dilated path with "same" padding.
    for d in (1, 2):
        out = jax.block_until_ready(
            dilated_with_projection(x, params, dilate_rate=d))
        ref = _reference(x, params, d)
        assert out.shape == (N, C, H, W)
        err = float(jnp.max(jnp.abs(out - ref)))
        assert err < 1e-3, f"dilate_rate={d}: max abs err {err}"

    print("KERNEL_OK")
</pallas_src>

<mosaic_0001>
module attributes {stable_mosaic.version = 11 : i64} {
  func.func @_dilated_block_kernel(%arg0: i32, %arg1: memref<2x4x256xf32, #tpu.memory_space<vmem>>, %arg2: memref<4x4xf32, #tpu.memory_space<vmem>>, %arg3: memref<9x4x4xf32, #tpu.memory_space<vmem>>, %arg4: memref<4x4xf32, #tpu.memory_space<vmem>>, %arg5: memref<4x4xf32, #tpu.memory_space<vmem>>, %arg6: memref<4x4x1xf32, #tpu.memory_space<vmem>>, %arg7: memref<9x1x256xf32, #tpu.memory_space<vmem>>, %arg8: memref<2x4x256xf32, #tpu.memory_space<vmem>>) attributes {dimension_semantics = [#tpu.dimension_semantics<parallel>], iteration_bounds = array<i64: 1>, scalar_prefetch = 0 : i64, scratch_operands = 0 : i64, tpu.core_type = #tpu.core_type<tc>, window_params = [{transform_indices = @transform_0, window_bounds = array<i64: 2, 4, 256>}, {pipeline_mode = #tpu.pipeline_mode<synchronous>, transform_indices = @transform_1, window_bounds = array<i64: 4, 4>}, {pipeline_mode = #tpu.pipeline_mode<synchronous>, transform_indices = @transform_2, window_bounds = array<i64: 9, 4, 4>}, {pipeline_mode = #tpu.pipeline_mode<synchronous>, transform_indices = @transform_3, window_bounds = array<i64: 4, 4>}, {pipeline_mode = #tpu.pipeline_mode<synchronous>, transform_indices = @transform_4, window_bounds = array<i64: 4, 4>}, {pipeline_mode = #tpu.pipeline_mode<synchronous>, transform_indices = @transform_5, window_bounds = array<i64: 4, 4, 1>}, {pipeline_mode = #tpu.pipeline_mode<synchronous>, transform_indices = @transform_6, window_bounds = array<i64: 9, 1, 256>}, {transform_indices = @transform_7, window_bounds = array<i64: 2, 4, 256>}]} {
    %c0 = arith.constant 0 : index
    %c0_0 = arith.constant 0 : index
    %0 = vector.load %arg2[%c0, %c0_0] : memref<4x4xf32, #tpu.memory_space<vmem>>, vector<4x4xf32>
    %c0_1 = arith.constant 0 : index
    %c0_2 = arith.constant 0 : index
    %c0_3 = arith.constant 0 : index
    %1 = vector.load %arg3[%c0_1, %c0_2, %c0_3] : memref<9x4x4xf32, #tpu.memory_space<vmem>>, vector<9x4x4xf32>
    %c0_4 = arith.constant 0 : index
    %c0_5 = arith.constant 0 : index
    %2 = vector.load %arg4[%c0_4, %c0_5] : memref<4x4xf32, #tpu.memory_space<vmem>>, vector<4x4xf32>
    %c0_6 = arith.constant 0 : index
    %c0_7 = arith.constant 0 : index
    %3 = vector.load %arg5[%c0_6, %c0_7] : memref<4x4xf32, #tpu.memory_space<vmem>>, vector<4x4xf32>
    %c0_8 = arith.constant 0 : index
    %c0_9 = arith.constant 0 : index
    %c0_10 = arith.constant 0 : index
    %4 = vector.load %arg6[%c0_8, %c0_9, %c0_10] : memref<4x4x1xf32, #tpu.memory_space<vmem>>, vector<1x4x1xf32>
    %5 = vector.shape_cast %4 : vector<1x4x1xf32> to vector<4x1xf32>
    %c1 = arith.constant 1 : index
    %c0_11 = arith.constant 0 : index
    %c0_12 = arith.constant 0 : index
    %6 = vector.load %arg6[%c1, %c0_11, %c0_12] : memref<4x4x1xf32, #tpu.memory_space<vmem>>, vector<1x4x1xf32>
    %7 = vector.shape_cast %6 : vector<1x4x1xf32> to vector<4x1xf32>
    %c2 = arith.constant 2 : index
    %c0_13 = arith.constant 0 : index
    %c0_14 = arith.constant 0 : index
    %8 = vector.load %arg6[%c2, %c0_13, %c0_14] : memref<4x4x1xf32, #tpu.memory_space<vmem>>, vector<1x4x1xf32>
    %9 = vector.shape_cast %8 : vector<1x4x1xf32> to vector<4x1xf32>
    %c3 = arith.constant 3 : index
    %c0_15 = arith.constant 0 : index
    %c0_16 = arith.constant 0 : index
    %10 = vector.load %arg6[%c3, %c0_15, %c0_16] : memref<4x4x1xf32, #tpu.memory_space<vmem>>, vector<1x4x1xf32>
    %11 = vector.shape_cast %10 : vector<1x4x1xf32> to vector<4x1xf32>
    %c0_17 = arith.constant 0 : index
    %c0_18 = arith.constant 0 : index
    %c0_19 = arith.constant 0 : index
    %12 = vector.load %arg1[%c0_17, %c0_18, %c0_19] : memref<2x4x256xf32, #tpu.memory_space<vmem>>, vector<1x4x256xf32>
    %13 = vector.shape_cast %12 : vector<1x4x256xf32> to vector<4x256xf32>
    %cst = arith.constant dense<0.000000e+00> : vector<4x256xf32>
    %14 = tpu.matmul %0, %13, %cst {dimension_numbers = #tpu.dot_dimension_numbers<[1], [0], [0], [1], [0, 0, 1, 1], [], []>} : vector<4x4xf32>, vector<4x256xf32>, vector<4x256xf32> -> vector<4x256xf32>
    %15 = vector.broadcast %5 : vector<4x1xf32> to vector<4x256xf32>
    %16 = arith.addf %14, %15 : vector<4x256xf32>
    %cst_20 = arith.constant 0.000000e+00 : f32
    %17 = vector.broadcast %cst_20 : f32 to vector<4x256xf32>
    %18 = arith.maximumf %16, %17 : vector<4x256xf32>
    %19 = vector.extract_strided_slice %1 {offsets = [4, 0, 0], sizes = [1, 4, 4], strides = [1, 1, 1]} : vector<9x4x4xf32> to vector<1x4x4xf32>
    %20 = vector.shape_cast %19 : vector<1x4x4xf32> to vector<4x4xf32>
    %cst_21 = arith.constant dense<0.000000e+00> : vector<4x256xf32>
    %21 = tpu.matmul %20, %18, %cst_21 {dimension_numbers = #tpu.dot_dimension_numbers<[1], [0], [0], [1], [0, 0, 1, 1], [], []>} : vector<4x4xf32>, vector<4x256xf32>, vector<4x256xf32> -> vector<4x256xf32>
    %22 = vector.extract_strided_slice %18 {offsets = [0, 239], sizes = [4, 17], strides = [1, 1]} : vector<4x256xf32> to vector<4x17xf32>
    %23 = vector.extract_strided_slice %18 {offsets = [0, 0], sizes = [4, 239], strides = [1, 1]} : vector<4x256xf32> to vector<4x239xf32>
    %24 = tpu.concatenate %22, %23 in 1 : vector<4x17xf32>, vector<4x239xf32> -> vector<4x256xf32>
    %c0_22 = arith.constant 0 : index
    %c0_23 = arith.constant 0 : index
    %c0_24 = arith.constant 0 : index
    %25 = vector.load %arg7[%c0_22, %c0_23, %c0_24] : memref<9x1x256xf32, #tpu.memory_space<vmem>>, vector<1x1x256xf32>
    %26 = vector.shape_cast %25 : vector<1x1x256xf32> to vector<1x256xf32>
    %27 = vector.broadcast %26 : vector<1x256xf32> to vector<4x256xf32>
    %28 = arith.mulf %24, %27 : vector<4x256xf32>
    %29 = vector.extract_strided_slice %1 {offsets = [0, 0, 0], sizes = [1, 4, 4], strides = [1, 1, 1]} : vector<9x4x4xf32> to vector<1x4x4xf32>
    %30 = vector.shape_cast %29 : vector<1x4x4xf32> to vector<4x4xf32>
    %cst_25 = arith.constant dense<0.000000e+00> : vector<4x256xf32>
    %31 = tpu.matmul %30, %28, %cst_25 {dimension_numbers = #tpu.dot_dimension_numbers<[1], [0], [0], [1], [0, 0, 1, 1], [], []>} : vector<4x4xf32>, vector<4x256xf32>, vector<4x256xf32> -> vector<4x256xf32>
    %32 = arith.addf %21, %31 : vector<4x256xf32>
    %33 = vector.extract_strided_slice %18 {offsets = [0, 240], sizes = [4, 16], strides = [1, 1]} : vector<4x256xf32> to vector<4x16xf32>
    %34 = vector.extract_strided_slice %18 {offsets = [0, 0], sizes = [4, 240], strides = [1, 1]} : vector<4x256xf32> to vector<4x240xf32>
    %35 = tpu.concatenate %33, %34 in 1 : vector<4x16xf32>, vector<4x240xf32> -> vector<4x256xf32>
    %c1_26 = arith.constant 1 : index
    %c0_27 = arith.constant 0 : index
    %c0_28 = arith.constant 0 : index
    %36 = vector.load %arg7[%c1_26, %c0_27, %c0_28] : memref<9x1x256xf32, #tpu.memory_space<vmem>>, vector<1x1x256xf32>
    %37 = vector.shape_cast %36 : vector<1x1x256xf32> to vector<1x256xf32>
    %38 = vector.broadcast %37 : vector<1x256xf32> to vector<4x256xf32>
    %39 = arith.mulf %35, %38 : vector<4x256xf32>
    %40 = vector.extract_strided_slice %1 {offsets = [1, 0, 0], sizes = [1, 4, 4], strides = [1, 1, 1]} : vector<9x4x4xf32> to vector<1x4x4xf32>
    %41 = vector.shape_cast %40 : vector<1x4x4xf32> to vector<4x4xf32>
    %cst_29 = arith.constant dense<0.000000e+00> : vector<4x256xf32>
    %42 = tpu.matmul %41, %39, %cst_29 {dimension_numbers = #tpu.dot_dimension_numbers<[1], [0], [0], [1], [0, 0, 1, 1], [], []>} : vector<4x4xf32>, vector<4x256xf32>, vector<4x256xf32> -> vector<4x256xf32>
    %43 = arith.addf %32, %42 : vector<4x256xf32>
    %44 = vector.extract_strided_slice %18 {offsets = [0, 241], sizes = [4, 15], strides = [1, 1]} : vector<4x256xf32> to vector<4x15xf32>
    %45 = vector.extract_strided_slice %18 {offsets = [0, 0], sizes = [4, 241], strides = [1, 1]} : vector<4x256xf32> to vector<4x241xf32>
    %46 = tpu.concatenate %44, %45 in 1 : vector<4x15xf32>, vector<4x241xf32> -> vector<4x256xf32>
    %c2_30 = arith.constant 2 : index
    %c0_31 = arith.constant 0 : index
    %c0_32 = arith.constant 0 : index
    %47 = vector.load %arg7[%c2_30, %c0_31, %c0_32] : memref<9x1x256xf32, #tpu.memory_space<vmem>>, vector<1x1x256xf32>
    %48 = vector.shape_cast %47 : vector<1x1x256xf32> to vector<1x256xf32>
    %49 = vector.broadcast %48 : vector<1x256xf32> to vector<4x256xf32>
    %50 = arith.mulf %46, %49 : vector<4x256xf32>
    %51 = vector.extract_strided_slice %1 {offsets = [2, 0, 0], sizes = [1, 4, 4], strides = [1, 1, 1]} : vector<9x4x4xf32> to vector<1x4x4xf32>
    %52 = vector.shape_cast %51 : vector<1x4x4xf32> to vector<4x4xf32>
    %cst_33 = arith.constant dense<0.000000e+00> : vector<4x256xf32>
    %53 = tpu.matmul %52, %50, %cst_33 {dimension_numbers = #tpu.dot_dimension_numbers<[1], [0], [0], [1], [0, 0, 1, 1], [], []>} : vector<4x4xf32>, vector<4x256xf32>, vector<4x256xf32> -> vector<4x256xf32>
    %54 = arith.addf %43, %53 : vector<4x256xf32>
    %55 = vector.extract_strided_slice %18 {offsets = [0, 255], sizes = [4, 1], strides = [1, 1]} : vector<4x256xf32> to vector<4x1xf32>
    %56 = vector.extract_strided_slice %18 {offsets = [0, 0], sizes = [4, 255], strides = [1, 1]} : vector<4x256xf32> to vector<4x255xf32>
    %57 = tpu.concatenate %55, %56 in 1 : vector<4x1xf32>, vector<4x255xf32> -> vector<4x256xf32>
    %c3_34 = arith.constant 3 : index
    %c0_35 = arith.constant 0 : index
    %c0_36 = arith.constant 0 : index
    %58 = vector.load %arg7[%c3_34, %c0_35, %c0_36] : memref<9x1x256xf32, #tpu.memory_space<vmem>>, vector<1x1x256xf32>
    %59 = vector.shape_cast %58 : vector<1x1x256xf32> to vector<1x256xf32>
    %60 = vector.broadcast %59 : vector<1x256xf32> to vector<4x256xf32>
    %61 = arith.mulf %57, %60 : vector<4x256xf32>
    %62 = vector.extract_strided_slice %1 {offsets = [3, 0, 0], sizes = [1, 4, 4], strides = [1, 1, 1]} : vector<9x4x4xf32> to vector<1x4x4xf32>
    %63 = vector.shape_cast %62 : vector<1x4x4xf32> to vector<4x4xf32>
    %cst_37 = arith.constant dense<0.000000e+00> : vector<4x256xf32>
    %64 = tpu.matmul %63, %61, %cst_37 {dimension_numbers = #tpu.dot_dimension_numbers<[1], [0], [0], [1], [0, 0, 1, 1], [], []>} : vector<4x4xf32>, vector<4x256xf32>, vector<4x256xf32> -> vector<4x256xf32>
    %65 = arith.addf %54, %64 : vector<4x256xf32>
    %66 = vector.extract_strided_slice %18 {offsets = [0, 1], sizes = [4, 255], strides = [1, 1]} : vector<4x256xf32> to vector<4x255xf32>
    %67 = vector.extract_strided_slice %18 {offsets = [0, 0], sizes = [4, 1], strides = [1, 1]} : vector<4x256xf32> to vector<4x1xf32>
    %68 = tpu.concatenate %66, %67 in 1 : vector<4x255xf32>, vector<4x1xf32> -> vector<4x256xf32>
    %c5 = arith.constant 5 : index
    %c0_38 = arith.constant 0 : index
    %c0_39 = arith.constant 0 : index
    %69 = vector.load %arg7[%c5, %c0_38, %c0_39] : memref<9x1x256xf32, #tpu.memory_space<vmem>>, vector<1x1x256xf32>
    %70 = vector.shape_cast %69 : vector<1x1x256xf32> to vector<1x256xf32>
    %71 = vector.broadcast %70 : vector<1x256xf32> to vector<4x256xf32>
    %72 = arith.mulf %68, %71 : vector<4x256xf32>
    %73 = vector.extract_strided_slice %1 {offsets = [5, 0, 0], sizes = [1, 4, 4], strides = [1, 1, 1]} : vector<9x4x4xf32> to vector<1x4x4xf32>
    %74 = vector.shape_cast %73 : vector<1x4x4xf32> to vector<4x4xf32>
    %cst_40 = arith.constant dense<0.000000e+00> : vector<4x256xf32>
    %75 = tpu.matmul %74, %72, %cst_40 {dimension_numbers = #tpu.dot_dimension_numbers<[1], [0], [0], [1], [0, 0, 1, 1], [], []>} : vector<4x4xf32>, vector<4x256xf32>, vector<4x256xf32> -> vector<4x256xf32>
    %76 = arith.addf %65, %75 : vector<4x256xf32>
    %77 = vector.extract_strided_slice %18 {offsets = [0, 15], sizes = [4, 241], strides = [1, 1]} : vector<4x256xf32> to vector<4x241xf32>
    %78 = vector.extract_strided_slice %18 {offsets = [0, 0], sizes = [4, 15], strides = [1, 1]} : vector<4x256xf32> to vector<4x15xf32>
    %79 = tpu.concatenate %77, %78 in 1 : vector<4x241xf32>, vector<4x15xf32> -> vector<4x256xf32>
    %c6 = arith.constant 6 : index
    %c0_41 = arith.constant 0 : index
    %c0_42 = arith.constant 0 : index
    %80 = vector.load %arg7[%c6, %c0_41, %c0_42] : memref<9x1x256xf32, #tpu.memory_space<vmem>>, vector<1x1x256xf32>
    %81 = vector.shape_cast %80 : vector<1x1x256xf32> to vector<1x256xf32>
    %82 = vector.broadcast %81 : vector<1x256xf32> to vector<4x256xf32>
    %83 = arith.mulf %79, %82 : vector<4x256xf32>
    %84 = vector.extract_strided_slice %1 {offsets = [6, 0, 0], sizes = [1, 4, 4], strides = [1, 1, 1]} : vector<9x4x4xf32> to vector<1x4x4xf32>
    %85 = vector.shape_cast %84 : vector<1x4x4xf32> to vector<4x4xf32>
    %cst_43 = arith.constant dense<0.000000e+00> : vector<4x256xf32>
    %86 = tpu.matmul %85, %83, %cst_43 {dimension_numbers = #tpu.dot_dimension_numbers<[1], [0], [0], [1], [0, 0, 1, 1], [], []>} : vector<4x4xf32>, vector<4x256xf32>, vector<4x256xf32> -> vector<4x256xf32>
    %87 = arith.addf %76, %86 : vector<4x256xf32>
    %88 = vector.extract_strided_slice %18 {offsets = [0, 16], sizes = [4, 240], strides = [1, 1]} : vector<4x256xf32> to vector<4x240xf32>
    %89 = vector.extract_strided_slice %18 {offsets = [0, 0], sizes = [4, 16], strides = [1, 1]} : vector<4x256xf32> to vector<4x16xf32>
    %90 = tpu.concatenate %88, %89 in 1 : vector<4x240xf32>, vector<4x16xf32> -> vector<4x256xf32>
    %c7 = arith.constant 7 : index
    %c0_44 = arith.constant 0 : index
    %c0_45 = arith.constant 0 : index
    %91 = vector.load %arg7[%c7, %c0_44, %c0_45] : memref<9x1x256xf32, #tpu.memory_space<vmem>>, vector<1x1x256xf32>
    %92 = vector.shape_cast %91 : vector<1x1x256xf32> to vector<1x256xf32>
    %93 = vector.broadcast %92 : vector<1x256xf32> to vector<4x256xf32>
    %94 = arith.mulf %90, %93 : vector<4x256xf32>
    %95 = vector.extract_strided_slice %1 {offsets = [7, 0, 0], sizes = [1, 4, 4], strides = [1, 1, 1]} : vector<9x4x4xf32> to vector<1x4x4xf32>
    %96 = vector.shape_cast %95 : vector<1x4x4xf32> to vector<4x4xf32>
    %cst_46 = arith.constant dense<0.000000e+00> : vector<4x256xf32>
    %97 = tpu.matmul %96, %94, %cst_46 {dimension_numbers = #tpu.dot_dimension_numbers<[1], [0], [0], [1], [0, 0, 1, 1], [], []>} : vector<4x4xf32>, vector<4x256xf32>, vector<4x256xf32> -> vector<4x256xf32>
    %98 = arith.addf %87, %97 : vector<4x256xf32>
    %99 = vector.extract_strided_slice %18 {offsets = [0, 17], sizes = [4, 239], strides = [1, 1]} : vector<4x256xf32> to vector<4x239xf32>
    %100 = vector.extract_strided_slice %18 {offsets = [0, 0], sizes = [4, 17], strides = [1, 1]} : vector<4x256xf32> to vector<4x17xf32>
    %101 = tpu.concatenate %99, %100 in 1 : vector<4x239xf32>, vector<4x17xf32> -> vector<4x256xf32>
    %c8 = arith.constant 8 : index
    %c0_47 = arith.constant 0 : index
    %c0_48 = arith.constant 0 : index
    %102 = vector.load %arg7[%c8, %c0_47, %c0_48] : memref<9x1x256xf32, #tpu.memory_space<vmem>>, vector<1x1x256xf32>
    %103 = vector.shape_cast %102 : vector<1x1x256xf32> to vector<1x256xf32>
    %104 = vector.broadcast %103 : vector<1x256xf32> to vector<4x256xf32>
    %105 = arith.mulf %101, %104 : vector<4x256xf32>
    %106 = vector.extract_strided_slice %1 {offsets = [8, 0, 0], sizes = [1, 4, 4], strides = [1, 1, 1]} : vector<9x4x4xf32> to vector<1x4x4xf32>
    %107 = vector.shape_cast %106 : vector<1x4x4xf32> to vector<4x4xf32>
    %cst_49 = arith.constant dense<0.000000e+00> : vector<4x256xf32>
    %108 = tpu.matmul %107, %105, %cst_49 {dimension_numbers = #tpu.dot_dimension_numbers<[1], [0], [0], [1], [0, 0, 1, 1], [], []>} : vector<4x4xf32>, vector<4x256xf32>, vector<4x256xf32> -> vector<4x256xf32>
    %109 = arith.addf %98, %108 : vector<4x256xf32>
    %110 = vector.broadcast %7 : vector<4x1xf32> to vector<4x256xf32>
    %111 = arith.addf %109, %110 : vector<4x256xf32>
    %cst_50 = arith.constant 0.000000e+00 : f32
    %112 = vector.broadcast %cst_50 : f32 to vector<4x256xf32>
    %113 = arith.maximumf %111, %112 : vector<4x256xf32>
    %cst_51 = arith.constant dense<0.000000e+00> : vector<4x256xf32>
    %114 = tpu.matmul %2, %113, %cst_51 {dimension_numbers = #tpu.dot_dimension_numbers<[1], [0], [0], [1], [0, 0, 1, 1], [], []>} : vector<4x4xf32>, vector<4x256xf32>, vector<4x256xf32> -> vector<4x256xf32>
    %115 = vector.broadcast %9 : vector<4x1xf32> to vector<4x256xf32>
    %116 = arith.addf %114, %115 : vector<4x256xf32>
    %cst_52 = arith.constant 0.000000e+00 : f32
    %117 = vector.broadcast %cst_52 : f32 to vector<4x256xf32>
    %118 = arith.maximumf %116, %117 : vector<4x256xf32>
    %cst_53 = arith.constant dense<0.000000e+00> : vector<4x256xf32>
    %119 = tpu.matmul %3, %13, %cst_53 {dimension_numbers = #tpu.dot_dimension_numbers<[1], [0], [0], [1], [0, 0, 1, 1], [], []>} : vector<4x4xf32>, vector<4x256xf32>, vector<4x256xf32> -> vector<4x256xf32>
    %120 = vector.broadcast %11 : vector<4x1xf32> to vector<4x256xf32>
    %121 = arith.addf %119, %120 : vector<4x256xf32>
    %122 = arith.addf %118, %121 : vector<4x256xf32>
    %cst_54 = arith.constant 0.000000e+00 : f32
    %123 = vector.broadcast %cst_54 : f32 to vector<4x256xf32>
    %124 = arith.maximumf %122, %123 : vector<4x256xf32>
    %c0_55 = arith.constant 0 : index
    %c0_56 = arith.constant 0 : index
    %c0_57 = arith.constant 0 : index
    %125 = vector.load %arg8[%c0_55, %c0_56, %c0_57] : memref<2x4x256xf32, #tpu.memory_space<vmem>>, vector<1x4x256xf32>
    %126 = vector.shape_cast %125 : vector<1x4x256xf32> to vector<4x256xf32>
    %127 = vector.shape_cast %124 : vector<4x256xf32> to vector<1x4x256xf32>
    tpu.vector_store %arg8[%c0_55, %c0_56, %c0_57], %127 {strides = array<i32>} : memref<2x4x256xf32, #tpu.memory_space<vmem>>, vector<1x4x256xf32>,
    %c1_58 = arith.constant 1 : index
    %c0_59 = arith.constant 0 : index
    %c0_60 = arith.constant 0 : index
    %128 = vector.load %arg1[%c1_58, %c0_59, %c0_60] : memref<2x4x256xf32, #tpu.memory_space<vmem>>, vector<1x4x256xf32>
    %129 = vector.shape_cast %128 : vector<1x4x256xf32> to vector<4x256xf32>
    %cst_61 = arith.constant dense<0.000000e+00> : vector<4x256xf32>
    %130 = tpu.matmul %0, %129, %cst_61 {dimension_numbers = #tpu.dot_dimension_numbers<[1], [0], [0], [1], [0, 0, 1, 1], [], []>} : vector<4x4xf32>, vector<4x256xf32>, vector<4x256xf32> -> vector<4x256xf32>
    %131 = vector.broadcast %5 : vector<4x1xf32> to vector<4x256xf32>
    %132 = arith.addf %130, %131 : vector<4x256xf32>
    %cst_62 = arith.constant 0.000000e+00 : f32
    %133 = vector.broadcast %cst_62 : f32 to vector<4x256xf32>
    %134 = arith.maximumf %132, %133 : vector<4x256xf32>
    %135 = vector.extract_strided_slice %1 {offsets = [4, 0, 0], sizes = [1, 4, 4], strides = [1, 1, 1]} : vector<9x4x4xf32> to vector<1x4x4xf32>
    %136 = vector.shape_cast %135 : vector<1x4x4xf32> to vector<4x4xf32>
    %cst_63 = arith.constant dense<0.000000e+00> : vector<4x256xf32>
    %137 = tpu.matmul %136, %134, %cst_63 {dimension_numbers = #tpu.dot_dimension_numbers<[1], [0], [0], [1], [0, 0, 1, 1], [], []>} : vector<4x4xf32>, vector<4x256xf32>, vector<4x256xf32> -> vector<4x256xf32>
    %138 = vector.extract_strided_slice %134 {offsets = [0, 239], sizes = [4, 17], strides = [1, 1]} : vector<4x256xf32> to vector<4x17xf32>
    %139 = vector.extract_strided_slice %134 {offsets = [0, 0], sizes = [4, 239], strides = [1, 1]} : vector<4x256xf32> to vector<4x239xf32>
    %140 = tpu.concatenate %138, %139 in 1 : vector<4x17xf32>, vector<4x239xf32> -> vector<4x256xf32>
    %c0_64 = arith.constant 0 : index
    %c0_65 = arith.constant 0 : index
    %c0_66 = arith.constant 0 : index
    %141 = vector.load %arg7[%c0_64, %c0_65, %c0_66] : memref<9x1x256xf32, #tpu.memory_space<vmem>>, vector<1x1x256xf32>
    %142 = vector.shape_cast %141 : vector<1x1x256xf32> to vector<1x256xf32>
    %143 = vector.broadcast %142 : vector<1x256xf32> to vector<4x256xf32>
    %144 = arith.mulf %140, %143 : vector<4x256xf32>
    %145 = vector.extract_strided_slice %1 {offsets = [0, 0, 0], sizes = [1, 4, 4], strides = [1, 1, 1]} : vector<9x4x4xf32> to vector<1x4x4xf32>
    %146 = vector.shape_cast %145 : vector<1x4x4xf32> to vector<4x4xf32>
    %cst_67 = arith.constant dense<0.000000e+00> : vector<4x256xf32>
    %147 = tpu.matmul %146, %144, %cst_67 {dimension_numbers = #tpu.dot_dimension_numbers<[1], [0], [0], [1], [0, 0, 1, 1], [], []>} : vector<4x4xf32>, vector<4x256xf32>, vector<4x256xf32> -> vector<4x256xf32>
    %148 = arith.addf %137, %147 : vector<4x256xf32>
    %149 = vector.extract_strided_slice %134 {offsets = [0, 240], sizes = [4, 16], strides = [1, 1]} : vector<4x256xf32> to vector<4x16xf32>
    %150 = vector.extract_strided_slice %134 {offsets = [0, 0], sizes = [4, 240], strides = [1, 1]} : vector<4x256xf32> to vector<4x240xf32>
    %151 = tpu.concatenate %149, %150 in 1 : vector<4x16xf32>, vector<4x240xf32> -> vector<4x256xf32>
    %c1_68 = arith.constant 1 : index
    %c0_69 = arith.constant 0 : index
    %c0_70 = arith.constant 0 : index
    %152 = vector.load %arg7[%c1_68, %c0_69, %c0_70] : memref<9x1x256xf32, #tpu.memory_space<vmem>>, vector<1x1x256xf32>
    %153 = vector.shape_cast %152 : vector<1x1x256xf32> to vector<1x256xf32>
    %154 = vector.broadcast %153 : vector<1x256xf32> to vector<4x256xf32>
    %155 = arith.mulf %151, %154 : vector<4x256xf32>
    %156 = vector.extract_strided_slice %1 {offsets = [1, 0, 0], sizes = [1, 4, 4], strides = [1, 1, 1]} : vector<9x4x4xf32> to vector<1x4x4xf32>
    %157 = vector.shape_cast %156 : vector<1x4x4xf32> to vector<4x4xf32>
    %cst_71 = arith.constant dense<0.000000e+00> : vector<4x256xf32>
    %158 = tpu.matmul %157, %155, %cst_71 {dimension_numbers = #tpu.dot_dimension_numbers<[1], [0], [0], [1], [0, 0, 1, 1], [], []>} : vector<4x4xf32>, vector<4x256xf32>, vector<4x256xf32> -> vector<4x256xf32>
    %159 = arith.addf %148, %158 : vector<4x256xf32>
    %160 = vector.extract_strided_slice %134 {offsets = [0, 241], sizes = [4, 15], strides = [1, 1]} : vector<4x256xf32> to vector<4x15xf32>
    %161 = vector.extract_strided_slice %134 {offsets = [0, 0], sizes = [4, 241], strides = [1, 1]} : vector<4x256xf32> to vector<4x241xf32>
    %162 = tpu.concatenate %160, %161 in 1 : vector<4x15xf32>, vector<4x241xf32> -> vector<4x256xf32>
    %c2_72 = arith.constant 2 : index
    %c0_73 = arith.constant 0 : index
    %c0_74 = arith.constant 0 : index
    %163 = vector.load %arg7[%c2_72, %c0_73, %c0_74] : memref<9x1x256xf32, #tpu.memory_space<vmem>>, vector<1x1x256xf32>
    %164 = vector.shape_cast %163 : vector<1x1x256xf32> to vector<1x256xf32>
    %165 = vector.broadcast %164 : vector<1x256xf32> to vector<4x256xf32>
    %166 = arith.mulf %162, %165 : vector<4x256xf32>
    %167 = vector.extract_strided_slice %1 {offsets = [2, 0, 0], sizes = [1, 4, 4], strides = [1, 1, 1]} : vector<9x4x4xf32> to vector<1x4x4xf32>
    %168 = vector.shape_cast %167 : vector<1x4x4xf32> to vector<4x4xf32>
    %cst_75 = arith.constant dense<0.000000e+00> : vector<4x256xf32>
    %169 = tpu.matmul %168, %166, %cst_75 {dimension_numbers = #tpu.dot_dimension_numbers<[1], [0], [0], [1], [0, 0, 1, 1], [], []>} : vector<4x4xf32>, vector<4x256xf32>, vector<4x256xf32> -> vector<4x256xf32>
    %170 = arith.addf %159, %169 : vector<4x256xf32>
    %171 = vector.extract_strided_slice %134 {offsets = [0, 255], sizes = [4, 1], strides = [1, 1]} : vector<4x256xf32> to vector<4x1xf32>
    %172 = vector.extract_strided_slice %134 {offsets = [0, 0], sizes = [4, 255], strides = [1, 1]} : vector<4x256xf32> to vector<4x255xf32>
    %173 = tpu.concatenate %171, %172 in 1 : vector<4x1xf32>, vector<4x255xf32> -> vector<4x256xf32>
    %c3_76 = arith.constant 3 : index
    %c0_77 = arith.constant 0 : index
    %c0_78 = arith.constant 0 : index
    %174 = vector.load %arg7[%c3_76, %c0_77, %c0_78] : memref<9x1x256xf32, #tpu.memory_space<vmem>>, vector<1x1x256xf32>
    %175 = vector.shape_cast %174 : vector<1x1x256xf32> to vector<1x256xf32>
    %176 = vector.broadcast %175 : vector<1x256xf32> to vector<4x256xf32>
    %177 = arith.mulf %173, %176 : vector<4x256xf32>
    %178 = vector.extract_strided_slice %1 {offsets = [3, 0, 0], sizes = [1, 4, 4], strides = [1, 1, 1]} : vector<9x4x4xf32> to vector<1x4x4xf32>
    %179 = vector.shape_cast %178 : vector<1x4x4xf32> to vector<4x4xf32>
    %cst_79 = arith.constant dense<0.000000e+00> : vector<4x256xf32>
    %180 = tpu.matmul %179, %177, %cst_79 {dimension_numbers = #tpu.dot_dimension_numbers<[1], [0], [0], [1], [0, 0, 1, 1], [], []>} : vector<4x4xf32>, vector<4x256xf32>, vector<4x256xf32> -> vector<4x256xf32>
    %181 = arith.addf %170, %180 : vector<4x256xf32>
    %182 = vector.extract_strided_slice %134 {offsets = [0, 1], sizes = [4, 255], strides = [1, 1]} : vector<4x256xf32> to vector<4x255xf32>
    %183 = vector.extract_strided_slice %134 {offsets = [0, 0], sizes = [4, 1], strides = [1, 1]} : vector<4x256xf32> to vector<4x1xf32>
    %184 = tpu.concatenate %182, %183 in 1 : vector<4x255xf32>, vector<4x1xf32> -> vector<4x256xf32>
    %c5_80 = arith.constant 5 : index
    %c0_81 = arith.constant 0 : index
    %c0_82 = arith.constant 0 : index
    %185 = vector.load %arg7[%c5_80, %c0_81, %c0_82] : memref<9x1x256xf32, #tpu.memory_space<vmem>>, vector<1x1x256xf32>
    %186 = vector.shape_cast %185 : vector<1x1x256xf32> to vector<1x256xf32>
    %187 = vector.broadcast %186 : vector<1x256xf32> to vector<4x256xf32>
    %188 = arith.mulf %184, %187 : vector<4x256xf32>
    %189 = vector.extract_strided_slice %1 {offsets = [5, 0, 0], sizes = [1, 4, 4], strides = [1, 1, 1]} : vector<9x4x4xf32> to vector<1x4x4xf32>
    %190 = vector.shape_cast %189 : vector<1x4x4xf32> to vector<4x4xf32>
    %cst_83 = arith.constant dense<0.000000e+00> : vector<4x256xf32>
    %191 = tpu.matmul %190, %188, %cst_83 {dimension_numbers = #tpu.dot_dimension_numbers<[1], [0], [0], [1], [0, 0, 1, 1], [], []>} : vector<4x4xf32>, vector<4x256xf32>, vector<4x256xf32> -> vector<4x256xf32>
    %192 = arith.addf %181, %191 : vector<4x256xf32>
    %193 = vector.extract_strided_slice %134 {offsets = [0, 15], sizes = [4, 241], strides = [1, 1]} : vector<4x256xf32> to vector<4x241xf32>
    %194 = vector.extract_strided_slice %134 {offsets = [0, 0], sizes = [4, 15], strides = [1, 1]} : vector<4x256xf32> to vector<4x15xf32>
    %195 = tpu.concatenate %193, %194 in 1 : vector<4x241xf32>, vector<4x15xf32> -> vector<4x256xf32>
    %c6_84 = arith.constant 6 : index
    %c0_85 = arith.constant 0 : index
    %c0_86 = arith.constant 0 : index
    %196 = vector.load %arg7[%c6_84, %c0_85, %c0_86] : memref<9x1x256xf32, #tpu.memory_space<vmem>>, vector<1x1x256xf32>
    %197 = vector.shape_cast %196 : vector<1x1x256xf32> to vector<1x256xf32>
    %198 = vector.broadcast %197 : vector<1x256xf32> to vector<4x256xf32>
    %199 = arith.mulf %195, %198 : vector<4x256xf32>
    %200 = vector.extract_strided_slice %1 {offsets = [6, 0, 0], sizes = [1, 4, 4], strides = [1, 1, 1]} : vector<9x4x4xf32> to vector<1x4x4xf32>
    %201 = vector.shape_cast %200 : vector<1x4x4xf32> to vector<4x4xf32>
    %cst_87 = arith.constant dense<0.000000e+00> : vector<4x256xf32>
    %202 = tpu.matmul %201, %199, %cst_87 {dimension_numbers = #tpu.dot_dimension_numbers<[1], [0], [0], [1], [0, 0, 1, 1], [], []>} : vector<4x4xf32>, vector<4x256xf32>, vector<4x256xf32> -> vector<4x256xf32>
    %203 = arith.addf %192, %202 : vector<4x256xf32>
    %204 = vector.extract_strided_slice %134 {offsets = [0, 16], sizes = [4, 240], strides = [1, 1]} : vector<4x256xf32> to vector<4x240xf32>
    %205 = vector.extract_strided_slice %134 {offsets = [0, 0], sizes = [4, 16], strides = [1, 1]} : vector<4x256xf32> to vector<4x16xf32>
    %206 = tpu.concatenate %204, %205 in 1 : vector<4x240xf32>, vector<4x16xf32> -> vector<4x256xf32>
    %c7_88 = arith.constant 7 : index
    %c0_89 = arith.constant 0 : index
    %c0_90 = arith.constant 0 : index
    %207 = vector.load %arg7[%c7_88, %c0_89, %c0_90] : memref<9x1x256xf32, #tpu.memory_space<vmem>>, vector<1x1x256xf32>
    %208 = vector.shape_cast %207 : vector<1x1x256xf32> to vector<1x256xf32>
    %209 = vector.broadcast %208 : vector<1x256xf32> to vector<4x256xf32>
    %210 = arith.mulf %206, %209 : vector<4x256xf32>
    %211 = vector.extract_strided_slice %1 {offsets = [7, 0, 0], sizes = [1, 4, 4], strides = [1, 1, 1]} : vector<9x4x4xf32> to vector<1x4x4xf32>
    %212 = vector.shape_cast %211 : vector<1x4x4xf32> to vector<4x4xf32>
    %cst_91 = arith.constant dense<0.000000e+00> : vector<4x256xf32>
    %213 = tpu.matmul %212, %210, %cst_91 {dimension_numbers = #tpu.dot_dimension_numbers<[1], [0], [0], [1], [0, 0, 1, 1], [], []>} : vector<4x4xf32>, vector<4x256xf32>, vector<4x256xf32> -> vector<4x256xf32>
    %214 = arith.addf %203, %213 : vector<4x256xf32>
    %215 = vector.extract_strided_slice %134 {offsets = [0, 17], sizes = [4, 239], strides = [1, 1]} : vector<4x256xf32> to vector<4x239xf32>
    %216 = vector.extract_strided_slice %134 {offsets = [0, 0], sizes = [4, 17], strides = [1, 1]} : vector<4x256xf32> to vector<4x17xf32>
    %217 = tpu.concatenate %215, %216 in 1 : vector<4x239xf32>, vector<4x17xf32> -> vector<4x256xf32>
    %c8_92 = arith.constant 8 : index
    %c0_93 = arith.constant 0 : index
    %c0_94 = arith.constant 0 : index
    %218 = vector.load %arg7[%c8_92, %c0_93, %c0_94] : memref<9x1x256xf32, #tpu.memory_space<vmem>>, vector<1x1x256xf32>
    %219 = vector.shape_cast %218 : vector<1x1x256xf32> to vector<1x256xf32>
    %220 = vector.broadcast %219 : vector<1x256xf32> to vector<4x256xf32>
    %221 = arith.mulf %217, %220 : vector<4x256xf32>
    %222 = vector.extract_strided_slice %1 {offsets = [8, 0, 0], sizes = [1, 4, 4], strides = [1, 1, 1]} : vector<9x4x4xf32> to vector<1x4x4xf32>
    %223 = vector.shape_cast %222 : vector<1x4x4xf32> to vector<4x4xf32>
    %cst_95 = arith.constant dense<0.000000e+00> : vector<4x256xf32>
    %224 = tpu.matmul %223, %221, %cst_95 {dimension_numbers = #tpu.dot_dimension_numbers<[1], [0], [0], [1], [0, 0, 1, 1], [], []>} : vector<4x4xf32>, vector<4x256xf32>, vector<4x256xf32> -> vector<4x256xf32>
    %225 = arith.addf %214, %224 : vector<4x256xf32>
    %226 = vector.broadcast %7 : vector<4x1xf32> to vector<4x256xf32>
    %227 = arith.addf %225, %226 : vector<4x256xf32>
    %cst_96 = arith.constant 0.000000e+00 : f32
    %228 = vector.broadcast %cst_96 : f32 to vector<4x256xf32>
    %229 = arith.maximumf %227, %228 : vector<4x256xf32>
    %cst_97 = arith.constant dense<0.000000e+00> : vector<4x256xf32>
    %230 = tpu.matmul %2, %229, %cst_97 {dimension_numbers = #tpu.dot_dimension_numbers<[1], [0], [0], [1], [0, 0, 1, 1], [], []>} : vector<4x4xf32>, vector<4x256xf32>, vector<4x256xf32> -> vector<4x256xf32>
    %231 = vector.broadcast %9 : vector<4x1xf32> to vector<4x256xf32>
    %232 = arith.addf %230, %231 : vector<4x256xf32>
    %cst_98 = arith.constant 0.000000e+00 : f32
    %233 = vector.broadcast %cst_98 : f32 to vector<4x256xf32>
    %234 = arith.maximumf %232, %233 : vector<4x256xf32>
    %cst_99 = arith.constant dense<0.000000e+00> : vector<4x256xf32>
    %235 = tpu.matmul %3, %129, %cst_99 {dimension_numbers = #tpu.dot_dimension_numbers<[1], [0], [0], [1], [0, 0, 1, 1], [], []>} : vector<4x4xf32>, vector<4x256xf32>, vector<4x256xf32> -> vector<4x256xf32>
    %236 = vector.broadcast %11 : vector<4x1xf32> to vector<4x256xf32>
    %237 = arith.addf %235, %236 : vector<4x256xf32>
    %238 = arith.addf %234, %237 : vector<4x256xf32>
    %cst_100 = arith.constant 0.000000e+00 : f32
    %239 = vector.broadcast %cst_100 : f32 to vector<4x256xf32>
    %240 = arith.maximumf %238, %239 : vector<4x256xf32>
    %c1_101 = arith.constant 1 : index
    %c0_102 = arith.constant 0 : index
    %c0_103 = arith.constant 0 : index
    %241 = vector.load %arg8[%c1_101, %c0_102, %c0_103] : memref<2x4x256xf32, #tpu.memory_space<vmem>>, vector<1x4x256xf32>
    %242 = vector.shape_cast %241 : vector<1x4x256xf32> to vector<4x256xf32>
    %243 = vector.shape_cast %240 : vector<4x256xf32> to vector<1x4x256xf32>
    tpu.vector_store %arg8[%c1_101, %c0_102, %c0_103], %243 {strides = array<i32>} : memref<2x4x256xf32, #tpu.memory_space<vmem>>, vector<1x4x256xf32>,
    return
  }
  func.func @transform_0(%arg0: i32) -> (i32, i32, i32) {
    %c0_i32 = arith.constant 0 : i32
    %c0_i32_0 = arith.constant 0 : i32
    %c0_i32_1 = arith.constant 0 : i32
    return %arg0, %c0_i32, %c0_i32_0 : i32, i32, i32
  }
  func.func @transform_1(%arg0: i32) -> (i32, i32) {
    %c0_i32 = arith.constant 0 : i32
    %c0_i32_0 = arith.constant 0 : i32
    %c0_i32_1 = arith.constant 0 : i32
    return %c0_i32, %c0_i32_0 : i32, i32
  }
  func.func @transform_2(%arg0: i32) -> (i32, i32, i32) {
    %c0_i32 = arith.constant 0 : i32
    %c0_i32_0 = arith.constant 0 : i32
    %c0_i32_1 = arith.constant 0 : i32
    %c0_i32_2 = arith.constant 0 : i32
    return %c0_i32, %c0_i32_0, %c0_i32_1 : i32, i32, i32
  }
  func.func @transform_3(%arg0: i32) -> (i32, i32) {
    %c0_i32 = arith.constant 0 : i32
    %c0_i32_0 = arith.constant 0 : i32
    %c0_i32_1 = arith.constant 0 : i32
    return %c0_i32, %c0_i32_0 : i32, i32
  }
  func.func @transform_4(%arg0: i32) -> (i32, i32) {
    %c0_i32 = arith.constant 0 : i32
    %c0_i32_0 = arith.constant 0 : i32
    %c0_i32_1 = arith.constant 0 : i32
    return %c0_i32, %c0_i32_0 : i32, i32
  }
  func.func @transform_5(%arg0: i32) -> (i32, i32, i32) {
    %c0_i32 = arith.constant 0 : i32
    %c0_i32_0 = arith.constant 0 : i32
    %c0_i32_1 = arith.constant 0 : i32
    %c0_i32_2 = arith.constant 0 : i32
    return %c0_i32, %c0_i32_0, %c0_i32_1 : i32, i32, i32
  }
  func.func @transform_6(%arg0: i32) -> (i32, i32, i32) {
    %c0_i32 = arith.constant 0 : i32
    %c0_i32_0 = arith.constant 0 : i32
    %c0_i32_1 = arith.constant 0 : i32
    %c0_i32_2 = arith.constant 0 : i32
    return %c0_i32, %c0_i32_0, %c0_i32_1 : i32, i32, i32
  }
  func.func @transform_7(%arg0: i32) -> (i32, i32, i32) {
    %c0_i32 = arith.constant 0 : i32
    %c0_i32_0 = arith.constant 0 : i32
    %c0_i32_1 = arith.constant 0 : i32
    return %arg0, %c0_i32, %c0_i32_0 : i32, i32, i32
  }
}

</mosaic_0001>

<bundles_post_ra>
// kernel: tpu_custom_call.1
= control target key start
LH: loop header
LB: loop body
LE: loop exit
PB: predicated region body
PF: predicated region fallthrough
CT: control target
= control target key end

     0   :  { %vm58_vm0 = vcmask 1043456   ;;  %v2568_v2 = vmov 0.0   ;;  %s3023_s0 = inlined_call_operand.vmem [shape: f32[2,4,256], index: 0, kind: input, shape index: {}]   ;;  %s3024_s1 = inlined_call_operand.vmem [shape: f32[4,4], index: 1, kind: input, shape index: {}]   ;;  %s3025_s2 = inlined_call_operand.vmem [shape: f32[9,4,4], index: 2, kind: input, shape index: {}]   ;;  %s3026_s3 = inlined_call_operand.vmem [shape: f32[4,4], index: 3, kind: input, shape index: {}]   ;;  %s3027_s4 = inlined_call_operand.vmem [shape: f32[4,4], index: 4, kind: input, shape index: {}]   ;;  %s3028_s5 = inlined_call_operand.vmem [shape: f32[4,4,1], index: 5, kind: input, shape index: {}]   ;;  %s3029_s6 = inlined_call_operand.vmem [shape: f32[9,1,256], index: 6, kind: input, shape index: {}]   ;;  %s3030_s7 = inlined_call_operand.hbm [shape: f32[2,4,256], index: 7, kind: output, shape index: {}]  }
   0x1   :  { %v2624_v0 = vld [vmem:[%s3023_s0] sm:$0xff]  ;;  %127 = vmatprep.mubr.f32.mxu1 %v2568_v2  ;;  %1156 = vmatprep.mubr.f32.mxu0 %v2568_v2 }
   0x2   :  { %v2628_v1 = vcombine.high %v2624_v0, %v2624_v0  ;;  %v39_v3 = vld [vmem:[%s3028_s5] sm:$0xf] }
   0x3   :  { %12 = vsyncpa [#allocation3], 0  ;;  %v2638_v4 = vld [vmem:[%s3024_s1] sm:$0xf]  ;;  %vm54_vm1 = vcmask 31744   ;;  %v2569_v5 = vmov 0   ;;  %v150_v14 = vlaneseq }
   0x4   :  { %2540 = vset.pattern.permute.xlu0 %v2569_v5  ;;  %2541 = vset.pattern.permute.xlu1 %v2569_v5  ;;  %s2570_s1 = smov 17   ;;  %s2571_s30 = smov 16   ;;  %v2405_v13 = vld [vmem:[%s3028_s5 + $0x4] sm:$0xf]  ;;  %v148_v18 = vld [vmem:[%s3029_s6] sm:$0x3] }
   0x5   :  { %2408 = vmatprep.subr.msk.mxu1 %vm58_vm0, %v2628_v1  ;;  %49 = vperm.xlu0 %2540, %v39_v3   ;;  %s2572_s8 = smov 15   ;;  %s2573_s9 = smov 1   ;;  %v151_v15 = vshrl.u32 %v150_v14, 7  ;;  %vm143_vm2 = vcmask 138240   ;;  %v2417_v22 = vld [vmem:[%s3029_s6 + $0x2] sm:$0x3] }
   0x6   :  { %2409 = vmatpush1.msk.msra.mxu1 %vm58_vm0, %v2624_v0  ;;  %s2574_s10 = smov 127   ;;  %s2575_s11 = smov 113   ;;  %vm325_vm3 = vcmask 130048   ;;  %v2688_v30 = vld [vmem:[%s3025_s2] sm:$0xf]  ;;  %vm432_vm4 = vcmask 121856  }
   0x7   :  { %2410 = vmatmul.mubr.msk.f32.vlgmr.msra.gmra.mrb[0].mxu1 %vm54_vm1, %v2638_v4  ;;  %s2576_s12 = smov 112   ;;  %s2577_s13 = smov 111   ;;  %v2670_v16 = vsub.s32 0, %v151_v15  ;;  %v2672_v17 = vsub.s32 1, %v151_v15  ;;  %v2421_v34 = vld [vmem:[%s3029_s6 + $0x4] sm:$0x3] }
   0x8   :  { %235 = vmatprep.mubr.f32.mxu1 %v2568_v2  ;;  %v2709_v41 = vld [vmem:[%s3025_s2 + $0x10] sm:$0xf]  ;;  %v2425_v44 = vld [vmem:[%s3029_s6 + $0x6] sm:$0x3]  ;;  %vm539_vm5 = vcmask 7168   ;;  %vm645_vm6 = vcmask 1039360  }
   0x9   :  { %v153_v19 = vrot.slane %v148_v18, %v2670_v16  ;;  %v157_v20 = vrot.slane %v148_v18, %v2672_v17  ;;  %v340_v28 = vrot.slane %v2417_v22, %v2672_v17  ;;  %v336_v37 = vrot.slane %v2417_v22, %v2670_v16  ;;  %v2726_v51 = vld [vmem:[%s3025_s2 + $0x4] sm:$0xf]  ;;  %v2429_v54 = vld [vmem:[%s3029_s6 + $0xa] sm:$0x3]  ;;  %v2433_v3 = vld [vmem:[%s3029_s6 + $0xc] sm:$0x3] }
   0xa   :  { %v447_v39 = vrot.slane %v2421_v34, %v2672_v17  ;;  %v443_v47 = vrot.slane %v2421_v34, %v2670_v16  ;;  %v554_v49 = vrot.slane %v2425_v44, %v2672_v17  ;;  %v550_v57 = vrot.slane %v2425_v44, %v2670_v16  ;;  %v2743_v61 = vld [vmem:[%s3025_s2 + $0x8] sm:$0xf]  ;;  %v2437_v15 = vld [vmem:[%s3029_s6 + $0xe] sm:$0x3] }
   0xb   :  { %v661_v59 = vrot.slane %v2429_v54, %v2672_v17  ;;  %vm752_vm7 = vcmask 924672   ;;  %vm859_vm8 = vcmask 916480   ;;  %v875_v22 = vrot.slane %v2437_v15, %v2672_v17 }
   0xc   :  { %vm966_vm9 = vcmask 908288  }
  0x84   :  { %v2647_v6 = vpop.permute.xlu0 %49 }
  0xda   :  { %v129_v7 = vpop.f32.mrb[0].mxu1 }
  0xdb   :  { %v130_v8 = vadd.f32 %v129_v7, %v2647_v6  ;;  %v131_v9 = vpop.f32.mrb[1].mxu1 }
  0xdc   :  { %v132_v10 = vadd.f32 %v131_v9, %v2647_v6 }
  0xdd   :  { %v134_v11 = vmax.f32 %v130_v8, 0.0  ;;  %v657_v8 = vrot.slane %v2429_v54, %v2670_v16 }
  0xde   :  { %v135_v12 = vmax.f32 %v132_v10, 0.0  ;;  %v768_v10 = vrot.slane %v2433_v3, %v2672_v17 }
  0xdf   :  { %141 = vrot.lane.b32.xlu1 %v134_v11, %s2570_s1 }
  0xe0   :  { %137 = vrot.lane.b32.xlu0 %v135_v12, %s2570_s1 }
  0xe3   :  { %320 = vrot.lane.b32.xlu1 %v135_v12, %s2571_s30 }
  0xe4   :  { %323 = vrot.lane.b32.xlu0 %v134_v11, %s2571_s30 }
  0xe7   :  { %427 = vrot.lane.b32.xlu1 %v135_v12, %s2572_s8 }
  0xe8   :  { %430 = vrot.lane.b32.xlu0 %v134_v11, %s2572_s8 }
  0xeb   :  { %534 = vrot.lane.b32.xlu1 %v135_v12, %s2573_s9 }
  0xec   :  { %537 = vrot.lane.b32.xlu0 %v134_v11, %s2573_s9 }
  0xef   :  { %641 = vrot.lane.b32.xlu1 %v134_v11, %s2574_s10 }
  0xf0   :  { %643 = vrot.lane.b32.xlu0 %v135_v12, %s2574_s10 }
  0xf3   :  { %748 = vrot.lane.b32.xlu1 %v134_v11, %s2575_s11 }
  0xf4   :  { %750 = vrot.lane.b32.xlu0 %v135_v12, %s2575_s11 }
  0xf7   :  { %855 = vrot.lane.b32.xlu1 %v134_v11, %s2576_s12 }
  0xf8   :  { %857 = vrot.lane.b32.xlu0 %v135_v12, %s2576_s12 }
  0xfb   :  { %962 = vrot.lane.b32.xlu1 %v134_v11, %s2577_s13 }
  0xfc   :  { %964 = vrot.lane.b32.xlu0 %v135_v12, %s2577_s13 }
  0xff   :  { %1071 = vperm.xlu1 %2541, %v2405_v13  }
 0x151   :  { %v142_v21 = vpop.permute.xlu1 %141 }
 0x152   :  { %v138_v23 = vpop.permute.xlu0 %137 }
 0x153   :  { %v144_v24 = vsel %vm143_vm2, %v142_v21, %v138_v23  ;;  %v147_v25 = vsel %vm143_vm2, %v138_v23, %v142_v21 }
 0x154   :  { %v160_v26 = vmul.f32 %v153_v19, %v147_v25  ;;  %v161_v27 = vmul.f32 %v157_v20, %v144_v24  ;;  %v764_v20 = vrot.slane %v2433_v3, %v2670_v16  ;;  %v2777_v24 = vld [vmem:[%s3025_s2 + $0x14] sm:$0xf] }
 0x155   :  { %v321_v29 = vpop.permute.xlu1 %320 }
 0x156   :  { %v324_v31 = vpop.permute.xlu0 %323  ;;  %2411 = vmatprep.subr.msk.mxu1 %vm58_vm0, %v161_v27  ;;  %v2441_v27 = vld [vmem:[%s3029_s6 + $0x10] sm:$0x3] }
 0x157   :  { %v326_v32 = vsel %vm325_vm3, %v324_v31, %v321_v29  ;;  %2412 = vmatpush1.msk.msra.mxu1 %vm58_vm0, %v160_v26  ;;  %v329_v38 = vsel %vm325_vm3, %v321_v29, %v324_v31  ;;  %v871_v31 = vrot.slane %v2437_v15, %v2670_v16 }
 0x158   :  { %v344_v33 = vmul.f32 %v340_v28, %v326_v32  ;;  %2413 = vmatmul.mubr.msk.f32.vlgmr.msra.gmra.mrb[2].mxu1 %vm54_vm1, %v2688_v30  ;;  %2414 = vmatprep.subr.msk.mxu1 %vm58_vm0, %v135_v12  ;;  %v343_v42 = vmul.f32 %v336_v37, %v329_v38  ;;  %v2760_v12 = vld [vmem:[%s3025_s2 + $0xc] sm:$0xf]  ;;  %v978_v38 = vrot.slane %v2441_v27, %v2670_v16 }
 0x159   :  { %2415 = vmatpush1.msk.msra.mxu1 %vm58_vm0, %v134_v11  ;;  %313 = vmatprep.mubr.f32.mxu1 %v2568_v2  ;;  %v428_v35 = vpop.permute.xlu1 %427 }
 0x15a   :  { %v431_v36 = vpop.permute.xlu0 %430  ;;  %2418 = vmatprep.subr.msk.mxu1 %vm58_vm0, %v344_v33  ;;  %v982_v33 = vrot.slane %v2441_v27, %v2672_v17 }
 0x15b   :  { %v433_v40 = vsel %vm432_vm4, %v431_v36, %v428_v35  ;;  %v436_v48 = vsel %vm432_vm4, %v428_v35, %v431_v36  ;;  %v2794_v35 = vld [vmem:[%s3025_s2 + $0x18] sm:$0xf] }
 0x15c   :  { %v451_v43 = vmul.f32 %v447_v39, %v433_v40  ;;  %v450_v52 = vmul.f32 %v443_v47, %v436_v48  ;;  %v2806_v40 = vld [vmem:[%s3025_s2 + $0x1c] sm:$0xf] }
 0x15d   :  { %v535_v45 = vpop.permute.xlu1 %534 }
 0x15e   :  { %v538_v46 = vpop.permute.xlu0 %537 }
 0x15f   :  { %v540_v50 = vsel %vm539_vm5, %v538_v46, %v535_v45  ;;  %v543_v58 = vsel %vm539_vm5, %v535_v45, %v538_v46 }
 0x160   :  { %2416 = vmatmul.mubr.msk.f32.vlgmr.msra.gmra.mrb[2].mxu1 %vm54_vm1, %v2709_v41  ;;  %v558_v53 = vmul.f32 %v554_v49, %v540_v50  ;;  %v557_v62 = vmul.f32 %v550_v57, %v543_v58  ;;  %v2827_v49 = vld [vmem:[%s3023_s0 + $0x8] sm:$0xff] }
 0x161   :  { %2419 = vmatpush1.msk.msra.mxu1 %vm58_vm0, %v343_v42  ;;  %418 = vmatprep.mubr.f32.mxu1 %v2568_v2  ;;  %v642_v55 = vpop.permute.xlu1 %641  ;;  %v2837_v54 = vcombine.high %v2827_v49, %v2827_v49 }
 0x162   :  { %2422 = vmatprep.subr.msk.mxu1 %vm58_vm0, %v451_v43  ;;  %v644_v56 = vpop.permute.xlu0 %643  ;;  %v2815_v43 = vld [vmem:[%s3025_s2 + $0x20] sm:$0xf] }
 0x163   :  { %v650_v60 = vsel %vm645_vm6, %v644_v56, %v642_v55  ;;  %v646_v9 = vsel %vm645_vm6, %v642_v55, %v644_v56  ;;  %v2850_v55 = vld [vmem:[%s3027_s4] sm:$0xf] }
 0x164   :  { %v665_v63 = vmul.f32 %v661_v59, %v650_v60  ;;  %v664_v13 = vmul.f32 %v657_v8, %v646_v9 }
 0x165   :  { %v749_v5 = vpop.permute.xlu1 %748 }
 0x166   :  { %v751_v7 = vpop.permute.xlu0 %750 }
 0x167   :  { %v757_v11 = vsel %vm752_vm7, %v751_v7, %v749_v5  ;;  %v753_v21 = vsel %vm752_vm7, %v749_v5, %v751_v7  ;;  %v1345_v5 = vld [vmem:[%s3029_s6] sm:$0x3] }
 0x168   :  { %2420 = vmatmul.mubr.msk.f32.vlgmr.msra.gmra.mrb[2].mxu1 %vm54_vm1, %v2726_v51  ;;  %v772_v14 = vmul.f32 %v768_v10, %v757_v11  ;;  %v771_v25 = vmul.f32 %v764_v20, %v753_v21  ;;  %v1350_v7 = vrot.slane %v1345_v5, %v2670_v16  ;;  %v1354_v8 = vrot.slane %v1345_v5, %v2672_v17  ;;  %v2461_v10 = vld [vmem:[%s3029_s6 + $0x2] sm:$0x3] }
 0x169   :  { %2423 = vmatpush1.msk.msra.mxu1 %vm58_vm0, %v450_v52  ;;  %525 = vmatprep.mubr.f32.mxu1 %v2568_v2  ;;  %v856_v18 = vpop.permute.xlu1 %855 }
 0x16a   :  { %2426 = vmatprep.subr.msk.mxu1 %vm58_vm0, %v558_v53  ;;  %v858_v19 = vpop.permute.xlu0 %857  ;;  %v2832_v53 = vld [vmem:[%s3026_s3] sm:$0xf] }
 0x16b   :  { %v864_v23 = vsel %vm859_vm8, %v858_v19, %v856_v18  ;;  %v860_v32 = vsel %vm859_vm8, %v856_v18, %v858_v19  ;;  %v1529_v19 = vrot.slane %v2461_v10, %v2672_v17 }
 0x16c   :  { %v879_v26 = vmul.f32 %v875_v22, %v864_v23  ;;  %v878_v36 = vmul.f32 %v871_v31, %v860_v32 }
 0x16d   :  { %v963_v28 = vpop.permute.xlu1 %962 }
 0x16e   :  { %v965_v29 = vpop.permute.xlu0 %964 }
 0x16f   :  { %v971_v34 = vsel %vm966_vm9, %v965_v29, %v963_v28  ;;  %v967_v39 = vsel %vm966_vm9, %v963_v28, %v965_v29  ;;  %v1525_v28 = vrot.slane %v2461_v10, %v2670_v16 }
 0x170   :  { %2424 = vmatmul.mubr.msk.f32.vlgmr.msra.gmra.mrb[2].mxu1 %vm54_vm1, %v2743_v61  ;;  %v986_v37 = vmul.f32 %v982_v33, %v971_v34  ;;  %v985_v42 = vmul.f32 %v978_v38, %v967_v39  ;;  %v2469_v34 = vld [vmem:[%s3029_s6 + $0x6] sm:$0x3] }
 0x171   :  { %2427 = vmatpush1.msk.msra.mxu1 %vm58_vm0, %v557_v62  ;;  %632 = vmatprep.mubr.f32.mxu1 %v2568_v2 }
 0x172   :  { %2430 = vmatprep.subr.msk.mxu1 %vm58_vm0, %v665_v63 }
 0x178   :  { %2428 = vmatmul.mubr.msk.f32.vlgmr.msra.gmra.mrb[2].mxu1 %vm54_vm1, %v2760_v12 }
 0x179   :  { %2431 = vmatpush1.msk.msra.mxu1 %vm58_vm0, %v664_v13  ;;  %739 = vmatprep.mubr.f32.mxu1 %v2568_v2 }
 0x17a   :  { %2434 = vmatprep.subr.msk.mxu1 %vm58_vm0, %v772_v14 }
 0x17e   :  { %v2820_v44 = vpop.permute.xlu1 %1071 }
 0x180   :  { %2432 = vmatmul.mubr.msk.f32.vlgmr.msra.gmra.mrb[2].mxu1 %vm54_vm1, %v2777_v24 }
 0x181   :  { %2435 = vmatpush1.msk.msra.mxu1 %vm58_vm0, %v771_v25  ;;  %846 = vmatprep.mubr.f32.mxu1 %v2568_v2  ;;  %v2465_v25 = vld [vmem:[%s3029_s6 + $0x4] sm:$0x3] }
 0x182   :  { %2438 = vmatprep.subr.msk.mxu1 %vm58_vm0, %v879_v26  ;;  %v1627_v38 = vrot.slane %v2465_v25, %v2670_v16 }
 0x188   :  { %2436 = vmatmul.mubr.msk.f32.vlgmr.msra.gmra.mrb[2].mxu1 %vm54_vm1, %v2794_v35 }
 0x189   :  { %2439 = vmatpush1.msk.msra.mxu1 %vm58_vm0, %v878_v36  ;;  %953 = vmatprep.mubr.f32.mxu1 %v2568_v2 }
 0x18a   :  { %2442 = vmatprep.subr.msk.mxu1 %vm58_vm0, %v986_v37 }
 0x190   :  { %2440 = vmatmul.mubr.msk.f32.vlgmr.msra.gmra.mrb[2].mxu1 %vm54_vm1, %v2806_v40 }
 0x191   :  { %2443 = vmatpush1.msk.msra.mxu1 %vm58_vm0, %v985_v42  ;;  %1060 = vmatprep.mubr.f32.mxu1 %v2568_v2  ;;  %v1733_v42 = vrot.slane %v2469_v34, %v2672_v17 }
 0x198   :  { %2444 = vmatmul.mubr.msk.f32.vlgmr.msra.gmra.mrb[2].mxu1 %vm54_vm1, %v2815_v43 }
 0x199   :  { %2299 = vmatprep.mubr.f32.mxu1 %v2568_v2 }
 0x26b   :  { %v1062_v45 = vpop.f32.mrb[2].mxu1 }
 0x26c   :  { %v1064_v46 = vpop.f32.mrb[3].mxu1  ;;  %v1074_v47 = vadd.f32 %v2820_v44, %v1062_v45 }
 0x26d   :  { %v1075_v48 = vadd.f32 %v2820_v44, %v1064_v46 }
 0x26e   :  { %v1076_v52 = vmax.f32 %v1074_v47, 0.0 }
 0x26f   :  { %v1077_v50 = vmax.f32 %v1075_v48, 0.0  ;;  %v2473_v48 = vld [vmem:[%s3029_s6 + $0xa] sm:$0x3] }
 0x271   :  { %2445 = vmatprep.subr.msk.mxu0 %vm58_vm0, %v1077_v50 }
 0x272   :  { %2446 = vmatpush1.msk.msra.mxu0 %vm58_vm0, %v1076_v52  ;;  %v1729_v52 = vrot.slane %v2469_v34, %v2670_v16 }
 0x273   :  { %2447 = vmatmul.mubr.msk.f32.vlgmr.msra.gmra.mrb[0].mxu0 %vm54_vm1, %v2832_v53  ;;  %2448 = vmatprep.subr.msk.mxu0 %vm58_vm0, %v2628_v1 }
 0x274   :  { %2449 = vmatpush1.msk.msra.mxu0 %vm58_vm0, %v2624_v0  ;;  %1237 = vmatprep.mubr.f32.mxu0 %v2568_v2 }
 0x275   :  { %2452 = vmatprep.subr.msk.mxu0 %vm58_vm0, %v2837_v54 }
 0x277   :  { %2450 = vmatmul.mubr.msk.f32.vlgmr.msra.gmra.mrb[2].mxu0 %vm54_vm1, %v2850_v55 }
 0x278   :  { %2453 = vmatpush1.msk.msra.mxu0 %vm58_vm0, %v2827_v49  ;;  %1325 = vmatprep.mubr.f32.mxu0 %v2568_v2 }
 0x27b   :  { %2454 = vmatmul.mubr.msk.f32.vlgmr.msra.gmra.mrb[4].mxu0 %vm54_vm1, %v2638_v4  ;;  %v2407_v4 = vld [vmem:[%s3028_s5 + $0xc] sm:$0xf] }
 0x27c   :  { %1429 = vmatprep.mubr.f32.mxu0 %v2568_v2 }
 0x346   :  { %v2862_v0 = vpop.f32.mrb[0].mxu0 }
 0x347   :  { %v2864_v1 = vpop.f32.mrb[1].mxu0 }
 0x34a   :  { %v2866_v56 = vpop.f32.mrb[2].mxu0 }
 0x34b   :  { %v2868_v57 = vpop.f32.mrb[3].mxu0 }
 0x34e   :  { %v1327_v58 = vpop.f32.mrb[4].mxu0 }
 0x34f   :  { %v1328_v59 = vadd.f32 %v1327_v58, %v2647_v6  ;;  %v1329_v60 = vpop.f32.mrb[5].mxu0 }
 0x350   :  { %v1330_v62 = vadd.f32 %v1329_v60, %v2647_v6  ;;  %v2406_v6 = vld [vmem:[%s3028_s5 + $0x8] sm:$0xf] }
 0x351   :  { %v1332_v63 = vmax.f32 %v1328_v59, 0.0  ;;  %v1835_v59 = vrot.slane %v2473_v48, %v2672_v17 }
 0x352   :  { %v1333_v3 = vmax.f32 %v1330_v62, 0.0 }
 0x353   :  { %1339 = vrot.lane.b32.xlu1 %v1332_v63, %s2570_s1 }
 0x354   :  { %1335 = vrot.lane.b32.xlu0 %v1333_v3, %s2570_s1 }
 0x357   :  { %1514 = vrot.lane.b32.xlu1 %v1332_v63, %s2571_s30 }
 0x358   :  { %1511 = vrot.lane.b32.xlu0 %v1333_v3, %s2571_s30 }
 0x35b   :  { %1616 = vrot.lane.b32.xlu1 %v1332_v63, %s2572_s8 }
 0x35c   :  { %1613 = vrot.lane.b32.xlu0 %v1333_v3, %s2572_s8 }
 0x35f   :  { %1718 = vrot.lane.b32.xlu1 %v1332_v63, %s2573_s9 }
 0x360   :  { %1715 = vrot.lane.b32.xlu0 %v1333_v3, %s2573_s9 }
 0x363   :  { %1819 = vrot.lane.b32.xlu1 %v1333_v3, %s2574_s10 }
 0x364   :  { %1817 = vrot.lane.b32.xlu0 %v1332_v63, %s2574_s10 }
 0x367   :  { %1921 = vrot.lane.b32.xlu1 %v1333_v3, %s2575_s11 }
 0x368   :  { %1919 = vrot.lane.b32.xlu0 %v1332_v63, %s2575_s11 }
 0x36b   :  { %2023 = vrot.lane.b32.xlu1 %v1333_v3, %s2576_s12 }
 0x36c   :  { %2021 = vrot.lane.b32.xlu0 %v1332_v63, %s2576_s12 }
 0x36f   :  { %2125 = vrot.lane.b32.xlu1 %v1333_v3, %s2577_s13 }
 0x370   :  { %2123 = vrot.lane.b32.xlu0 %v1332_v63, %s2577_s13 }
 0x373   :  { %1167 = vperm.xlu1 %2541, %v2407_v4   ;;  %v2477_v4 = vld [vmem:[%s3029_s6 + $0xc] sm:$0x3] }
 0x374   :  { %1080 = vperm.xlu0 %2540, %v2406_v6   ;;  %v1831_v6 = vrot.slane %v2473_v48, %v2670_v16 }
 0x3c5   :  { %v1340_v9 = vpop.permute.xlu1 %1339 }
 0x3c6   :  { %v1336_v11 = vpop.permute.xlu0 %1335 }
 0x3c7   :  { %v1341_v13 = vsel %vm143_vm2, %v1340_v9, %v1336_v11  ;;  %v1344_v14 = vsel %vm143_vm2, %v1336_v11, %v1340_v9 }
 0x3c8   :  { %v1357_v15 = vmul.f32 %v1350_v7, %v1344_v14  ;;  %v1358_v18 = vmul.f32 %v1354_v8, %v1341_v13  ;;  %v1937_v7 = vrot.slane %v2477_v4, %v2672_v17  ;;  %v2481_v13 = vld [vmem:[%s3029_s6 + $0xe] sm:$0x3]  ;;  %v1933_v14 = vrot.slane %v2477_v4, %v2670_v16 }
 0x3c9   :  { %v1515_v20 = vpop.permute.xlu1 %1514 }
 0x3ca   :  { %v1512_v21 = vpop.permute.xlu0 %1511  ;;  %2455 = vmatprep.subr.msk.mxu0 %vm58_vm0, %v1358_v18 }
 0x3cb   :  { %v1516_v22 = vsel %vm325_vm3, %v1515_v20, %v1512_v21  ;;  %2456 = vmatpush1.msk.msra.mxu0 %vm58_vm0, %v1357_v15  ;;  %v1519_v29 = vsel %vm325_vm3, %v1512_v21, %v1515_v20  ;;  %v2039_v20 = vrot.slane %v2481_v13, %v2672_v17 }
 0x3cc   :  { %v1533_v23 = vmul.f32 %v1529_v19, %v1516_v22  ;;  %2457 = vmatmul.mubr.msk.f32.vlgmr.msra.gmra.mrb[6].mxu0 %vm54_vm1, %v2688_v30  ;;  %2458 = vmatprep.subr.msk.mxu0 %vm58_vm0, %v1333_v3  ;;  %v1631_v30 = vrot.slane %v2465_v25, %v2672_v17  ;;  %v1532_v32 = vmul.f32 %v1525_v28, %v1519_v29  ;;  %v2485_v28 = vld [vmem:[%s3029_s6 + $0x10] sm:$0x3]  ;;  %s2578_s6 = smov [#allocation2]  }
 0x3cd   :  { %2459 = vmatpush1.msk.msra.mxu0 %vm58_vm0, %v1332_v63  ;;  %1504 = vmatprep.mubr.f32.mxu0 %v2568_v2  ;;  %v1617_v26 = vpop.permute.xlu1 %1616  ;;  %s2394_s15 = sshll.u32 %s2578_s6, 4  ;;  %s2395_s15 = int_to_ptr.vmem [resolvable:$true] %s2394_s15 }
 0x3ce   :  { %v1614_v27 = vpop.permute.xlu0 %1613  ;;  %2462 = vmatprep.subr.msk.mxu0 %vm58_vm0, %v1533_v23  ;;  %s2544_s16 = scalar_lea.vmem %s2395_s15, 256  ;;  %p2549_p1 = scmp.lt.s32.totalorder %s2395_s15, %s2395_s15 }
 0x3cf   :  { %v1618_v31 = vsel %vm432_vm4, %v1617_v26, %v1614_v27  ;;  %v1621_v39 = vsel %vm432_vm4, %v1614_v27, %v1617_v26  ;;  %p2545_p0 = scmp.ne.s32.totalorder %s2395_s15, %s2544_s16  ;;  %p2550_p2 = scmp.lt.s32.totalorder %s2544_s16, %s2544_s16 }
 0x3d0   :  { %v1635_v33 = vmul.f32 %v1631_v30, %v1618_v31  ;;  %v1634_v45 = vmul.f32 %v1627_v38, %v1621_v39 }
 0x3d1   :  { %v1719_v36 = vpop.permute.xlu1 %1718  ;;  %p2551_p3 = por %p2550_p2, %p2549_p1 }
 0x3d2   :  { %v1716_v37 = vpop.permute.xlu0 %1715 }
 0x3d3   :  { %v1723_v58 = vsel %vm539_vm5, %v1716_v37, %v1719_v36  ;;  %p2552_p4 = pnand %p2551_p3, %p2545_p0 }
 0x3d4   :  { %2460 = vmatmul.mubr.msk.f32.vlgmr.msra.gmra.mrb[6].mxu0 %vm54_vm1, %v2709_v41  ;;  %v1720_v41 = vsel %vm539_vm5, %v1719_v36, %v1716_v37  ;;  %v1736_v60 = vmul.f32 %v1729_v52, %v1723_v58 }
 0x3d5   :  { %2463 = vmatpush1.msk.msra.mxu0 %vm58_vm0, %v1532_v32  ;;  %1604 = vmatprep.mubr.f32.mxu0 %v2568_v2  ;;  %v1737_v46 = vmul.f32 %v1733_v42, %v1720_v41  ;;  %v1820_v47 = vpop.permute.xlu1 %1819 }
 0x3d6   :  { %2466 = vmatprep.subr.msk.mxu0 %vm58_vm0, %v1635_v33  ;;  %v1818_v50 = vpop.permute.xlu0 %1817 }
 0x3d7   :  { %v1821_v5 = vsel %vm645_vm6, %v1818_v50, %v1820_v47 }
 0x3d8   :  { %v1838_v10 = vmul.f32 %v1831_v6, %v1821_v5 }
 0x3d9   :  { %v1922_v62 = vpop.permute.xlu1 %1921 }
 0x3da   :  { %v1920_v63 = vpop.permute.xlu0 %1919 }
 0x3db   :  { %v1927_v8 = vsel %vm752_vm7, %v1922_v62, %v1920_v63  ;;  %v1923_v19 = vsel %vm752_vm7, %v1920_v63, %v1922_v62 }
 0x3dc   :  { %2464 = vmatmul.mubr.msk.f32.vlgmr.msra.gmra.mrb[6].mxu0 %vm54_vm1, %v2726_v51  ;;  %v1825_v51 = vsel %vm645_vm6, %v1820_v47, %v1818_v50  ;;  %v1941_v11 = vmul.f32 %v1937_v7, %v1927_v8  ;;  %v1940_v21 = vmul.f32 %v1933_v14, %v1923_v19 }
 0x3dd   :  { %2467 = vmatpush1.msk.msra.mxu0 %vm58_vm0, %v1634_v45  ;;  %1706 = vmatprep.mubr.f32.mxu0 %v2568_v2  ;;  %v1839_v3 = vmul.f32 %v1835_v59, %v1825_v51  ;;  %v2024_v9 = vpop.permute.xlu1 %2023 }
 0x3de   :  { %2470 = vmatprep.subr.msk.mxu0 %vm58_vm0, %v1737_v46 }
 0x3e1   :  { %v2126_v15 = vpop.permute.xlu1 %2125 }
 0x3e4   :  { %2468 = vmatmul.mubr.msk.f32.vlgmr.msra.gmra.mrb[6].mxu0 %vm54_vm1, %v2743_v61  ;;  %v2022_v61 = vpop.permute.xlu0 %2021 }
 0x3e5   :  { %2471 = vmatpush1.msk.msra.mxu0 %vm58_vm0, %v1736_v60  ;;  %1808 = vmatprep.mubr.f32.mxu0 %v2568_v2 }
 0x3e6   :  { %2474 = vmatprep.subr.msk.mxu0 %vm58_vm0, %v1839_v3 }
 0x3e8   :  { %v2124_v18 = vpop.permute.xlu0 %2123 }
 0x3e9   :  { %v2131_v36 = vsel %vm966_vm9, %v2126_v15, %v2124_v18 }
 0x3ec   :  { %2472 = vmatmul.mubr.msk.f32.vlgmr.msra.gmra.mrb[6].mxu0 %vm54_vm1, %v2760_v12  ;;  %v2029_v12 = vsel %vm859_vm8, %v2024_v9, %v2022_v61 }
 0x3ed   :  { %2475 = vmatpush1.msk.msra.mxu0 %vm58_vm0, %v1838_v10  ;;  %1910 = vmatprep.mubr.f32.mxu0 %v2568_v2  ;;  %v2043_v25 = vmul.f32 %v2039_v20, %v2029_v12 }
 0x3ee   :  { %2478 = vmatprep.subr.msk.mxu0 %vm58_vm0, %v1941_v11 }
 0x3f2   :  { %v1168_v22 = vpop.permute.xlu1 %1167 }
 0x3f3   :  { %v1081_v23 = vpop.permute.xlu0 %1080  ;;  %v1240_v29 = vadd.f32 %v2866_v56, %v1168_v22  ;;  %v1242_v30 = vadd.f32 %v2868_v57, %v1168_v22  ;;  %v2127_v57 = vsel %vm966_vm9, %v2124_v18, %v2126_v15 }
 0x3f4   :  { %v1159_v26 = vadd.f32 %v2862_v0, %v1081_v23  ;;  %v1161_v27 = vadd.f32 %v2864_v1, %v1081_v23  ;;  %2476 = vmatmul.mubr.msk.f32.vlgmr.msra.gmra.mrb[6].mxu0 %vm54_vm1, %v2777_v24  ;;  %v2035_v0 = vrot.slane %v2481_v13, %v2670_v16  ;;  %v2025_v24 = vsel %vm859_vm8, %v2022_v61, %v2024_v9 }
 0x3f5   :  { %2479 = vmatpush1.msk.msra.mxu0 %vm58_vm0, %v1940_v21  ;;  %2012 = vmatprep.mubr.f32.mxu0 %v2568_v2  ;;  %v2141_v1 = vrot.slane %v2485_v28, %v2672_v17  ;;  %v2137_v17 = vrot.slane %v2485_v28, %v2670_v16 }
 0x3f6   :  { %v1163_v31 = vmax.f32 %v1159_v26, 0.0  ;;  %v1164_v32 = vmax.f32 %v1161_v27, 0.0  ;;  %2482 = vmatprep.subr.msk.mxu0 %vm58_vm0, %v2043_v25  ;;  %v2042_v39 = vmul.f32 %v2035_v0, %v2025_v24 }
 0x3f7   :  { %v2145_v56 = vmul.f32 %v2141_v1, %v2131_v36  ;;  %v2144_v41 = vmul.f32 %v2137_v17, %v2127_v57 }
 0x3f8   :  { %v1244_v33 = vadd.f32 %v1240_v29, %v1163_v31  ;;  %v1245_v34 = vadd.f32 %v1242_v30, %v1164_v32 }
 0x3fa   :  { %v1246_v37 = vmax.f32 %v1244_v33, 0.0  ;;  %v1247_v38 = vmax.f32 %v1245_v34, 0.0 }
 0x3fc   :  { %v1250_v42 = vcombine.low %v1246_v37, %v1247_v38  ;;  %2480 = vmatmul.mubr.msk.f32.vlgmr.msra.gmra.mrb[6].mxu0 %vm54_vm1, %v2794_v35 }
 0x3fd   :  { %2483 = vmatpush1.msk.msra.mxu0 %vm58_vm0, %v2042_v39  ;;  %2114 = vmatprep.mubr.f32.mxu0 %v2568_v2 }
 0x3fe   :  { %1252 = vst [vmem:[#allocation2] sm:$0xff] %v1250_v42  ;;  %2486 = vmatprep.subr.msk.mxu0 %vm58_vm0, %v2145_v56 }
 0x404   :  { %2484 = vmatmul.mubr.msk.f32.vlgmr.msra.gmra.mrb[6].mxu0 %vm54_vm1, %v2806_v40 }
 0x405   :  { %2487 = vmatpush1.msk.msra.mxu0 %vm58_vm0, %v2144_v41  ;;  %2216 = vmatprep.mubr.f32.mxu0 %v2568_v2 }
 0x40c   :  { %2488 = vmatmul.mubr.msk.f32.vlgmr.msra.gmra.mrb[6].mxu0 %vm54_vm1, %v2815_v43 }
 0x4df   :  { %v2218_v35 = vpop.f32.mrb[6].mxu0 }
 0x4e0   :  { %v2225_v45 = vadd.f32 %v2218_v35, %v2820_v44  ;;  %v2220_v46 = vpop.f32.mrb[7].mxu0 }
 0x4e1   :  { %v2226_v47 = vadd.f32 %v2220_v46, %v2820_v44 }
 0x4e2   :  { %v2227_v48 = vmax.f32 %v2225_v45, 0.0 }
 0x4e3   :  { %v2228_v16 = vmax.f32 %v2226_v47, 0.0 }
 0x4e5   :  { %2489 = vmatprep.subr.msk.mxu1 %vm58_vm0, %v2228_v16 }
 0x4e6   :  { %2490 = vmatpush1.msk.msra.mxu1 %vm58_vm0, %v2227_v48 }
 0x4e7   :  { %2491 = vmatmul.mubr.msk.f32.vlgmr.msra.gmra.mrb[4].mxu1 %vm54_vm1, %v2832_v53  ;;  %2492 = vmatprep.subr.msk.mxu1 %vm58_vm0, %v2837_v54 }
 0x4e8   :  { %2493 = vmatpush1.msk.msra.mxu1 %vm58_vm0, %v2827_v49  ;;  %2372 = vmatprep.mubr.f32.mxu1 %v2568_v2 }
 0x4eb   :  { %2494 = vmatmul.mubr.msk.f32.vlgmr.msra.gmra.mrb[6].mxu1 %vm54_vm1, %v2850_v55 }
 0x5ba   :  { %v2301_v40 = vpop.f32.mrb[4].mxu1 }
 0x5bb   :  { %v2302_v43 = vadd.f32 %v2301_v40, %v1081_v23  ;;  %v2303_v44 = vpop.f32.mrb[5].mxu1 }
 0x5bc   :  { %v2304_v50 = vadd.f32 %v2303_v44, %v1081_v23 }
 0x5bd   :  { %v2306_v58 = vmax.f32 %v2302_v43, 0.0 }
 0x5be   :  { %v2374_v52 = vpop.f32.mrb[6].mxu1  ;;  %v2307_v53 = vmax.f32 %v2304_v50, 0.0 }
 0x5bf   :  { %v2375_v59 = vadd.f32 %v2374_v52, %v1168_v22  ;;  %v2376_v51 = vpop.f32.mrb[7].mxu1 }
 0x5c0   :  { %v2377_v60 = vadd.f32 %v2376_v51, %v1168_v22 }
 0x5c1   :  { %v2379_v62 = vadd.f32 %v2375_v59, %v2306_v58 }
 0x5c2   :  { %v2380_v54 = vadd.f32 %v2377_v60, %v2307_v53 }
 0x5c3   :  { %v2381_v63 = vmax.f32 %v2379_v62, 0.0 }
 0x5c4   :  { %v2382_v49 = vmax.f32 %v2380_v54, 0.0 }
 0x5c6   :  { %v2385_v2 = vcombine.low %v2381_v63, %v2382_v49 }
 0x5c8   :  { %2388 = vst [vmem:[#allocation2 + $0x8] sm:$0xff] %v2385_v2 }
 0x5c9   :  { %2555 = shalt.err (!%p2552_p4)
}
 0x5ca   :  { %s2556_s19 = scalar_lea.hbm %s3030_s7, 256 }
 0x5cb   :  { %p2557_p5 = scmp.ne.s32.totalorder %s3030_s7, %s2556_s19  ;;  %p2560_p6 = scmp.lt.u32.totalorder %s2556_s19, %s3030_s7 }
 0x5cd   :  { %p2562_p7 = pnand %p2560_p6, %p2557_p5 }
 0x5cf   :  { %2565 = shalt.err (!%p2562_p7)
}
 0x5d0   :  { %s2579_s4 = smov 128   ;;  %s2580_s1 = smov 8  }
 0x5d1   :  { %2400 = dma.vmem_to_hbm [thread:$0]  %s2395_s15, 256, %s3030_s7, [#allocation3], %s2579_s4, %s2579_s4, %s2580_s1  }
 0x5d2   :  { %2566 = dma.done.wait [#allocation3], 256  }
 0x5d3   :  { %2567 = vsyncadd [#allocation3], 4294967040 }
 0x5d4   :  { %2404 = vsyncpa [#allocation3], 1 }

</bundles_post_ra>
